<compile_context>
chip_gen: v5e
topology: v5e:2x2
jax: 0.10.0
libtpu: 0.0.40
codegen_flags: <defaults>
</compile_context>

<pallas_src>
import functools

import jax
import jax.numpy as jnp
from jax.experimental import pallas as pl
from jax.experimental.pallas import tpu as pltpu


# ----------------------------------- kernel ------------------------------------------------
def _chan_ln_kernel(x_ref, g_ref, o_ref, *, eps, inv_c):
    # x_ref: (C, TN) block of one batch element; g_ref: (C, 1) gamma; o_ref: (C, TN)
    x = x_ref[...].astype(jnp.float32)
    # One pass over the block: per-lane (per-column) sums over the channel (sublane) axis.
    mean = jnp.sum(x, axis=0, keepdims=True) * inv_c            # (1, TN)
    meansq = jnp.sum(x * x, axis=0, keepdims=True) * inv_c      # (1, TN)
    var = meansq - mean * mean                                  # unbiased=False
    inv = jax.lax.rsqrt(jnp.maximum(var, eps))                  # var.clamp(min=eps).rsqrt()
    g = g_ref[...].astype(jnp.float32)                          # (C, 1) broadcasts over lanes
    o_ref[...] = ((x - mean) * inv * g).astype(o_ref.dtype)


# ----------------------------------- wrapper -----------------------------------------------
def _per_block_budget_bytes(requested=None):
    """Per-block byte budget: ~1-2 MiB, derived from the chip's VMEM capacity."""
    if requested is not None:
        return requested
    try:
        vmem = getattr(pltpu.get_tpu_info(), "vmem_capacity_bytes", None) or (64 << 20)
    except Exception:  # pragma: no cover - conservative fallback (e.g. interpret mode)
        vmem = 64 << 20
    # v7x: 64 MiB VMEM -> 1 MiB blocks; v5e/v6e: 128 MiB -> 2 MiB blocks.
    return max(512 * 1024, min(2 << 20, vmem // 64))


def chan_layer_norm(x, gamma, *, block_bytes=None):
    """x: (B, C, N); gamma: (1, C, 1) (PyTorch parameter layout). Returns (B, C, N)."""
    B, C, N = x.shape
    eps = 1e-6 if x.dtype == jnp.float32 else 1e-4

    itemsize = jnp.dtype(x.dtype).itemsize
    budget = _per_block_budget_bytes(block_bytes)
    # Lane-dense tile: multiple of 128 lanes, sized so one (C, tn) block ~= budget bytes,
    # never larger than N rounded up to a full lane group.
    tn = (budget // max(1, C * itemsize)) // 128 * 128
    tn = max(128, tn)
    tn = min(tn, pl.cdiv(N, 128) * 128)

    g2 = gamma.reshape(C, 1)
    grid = (B, pl.cdiv(N, tn))   # ragged last tile handled by Pallas masking (no pad/slice)

    return pl.pallas_call(
        functools.partial(_chan_ln_kernel, eps=eps, inv_c=1.0 / C),
        out_shape=jax.ShapeDtypeStruct((B, C, N), x.dtype),
        grid=grid,
        in_specs=[
            pl.BlockSpec((None, C, tn), lambda b, j: (b, 0, j)),   # batch dim squeezed out
            pl.BlockSpec((C, 1), lambda b, j: (0, 0)),             # gamma, resident in VMEM
        ],
        out_specs=pl.BlockSpec((None, C, tn), lambda b, j: (b, 0, j)),
        compiler_params=pltpu.CompilerParams(
            dimension_semantics=("parallel", "parallel"),
            vmem_limit_bytes=32 << 20,   # lift v5e's 16 MiB scoped default; safe on v6e/v7x
        ),
    )(x, g2)


# -------------------------------- pure-JAX reference ---------------------------------------
def chan_layer_norm_ref(x, gamma):
    eps = 1e-6 if x.dtype == jnp.float32 else 1e-4
    xf = x.astype(jnp.float32)
    mean = jnp.mean(xf, axis=1, keepdims=True)
    var = jnp.mean((xf - mean) ** 2, axis=1, keepdims=True)
    out = (xf - mean) * jax.lax.rsqrt(jnp.maximum(var, eps)) * gamma.astype(jnp.float32)
    return out.astype(x.dtype)


# ------------------------------------- main -------------------------------------------------
if __name__ == "__main__":
    key = jax.random.PRNGKey(0)
    k1, k2 = jax.random.split(key)

    B, C, N = 2, 64, 200                      # N deliberately not a multiple of 128
    x = jax.random.normal(k1, (B, C, N), dtype=jnp.float32)
    gamma = (1.0 + 0.1 * jax.random.normal(k2, (1, C, 1))).astype(jnp.float32)

    fn = jax.jit(chan_layer_norm)

    # float32 path (eps = 1e-6)
    y = fn(x, gamma)
    jax.block_until_ready(y)
    y_ref = chan_layer_norm_ref(x, gamma)
    err = float(jnp.max(jnp.abs(y - y_ref)))
    assert err < 1e-4, f"f32 mismatch: {err}"
    assert bool(jnp.all(jnp.isfinite(y))), "non-finite values leaked into valid columns"

    # bfloat16 path (exercises eps = 1e-4 branch; stats still in f32 inside the kernel)
    xb = x.astype(jnp.bfloat16)
    gb = gamma.astype(jnp.bfloat16)
    yb = fn(xb, gb)
    jax.block_until_ready(yb)
    yb_ref = chan_layer_norm_ref(xb, gb)
    errb = float(jnp.max(jnp.abs(yb.astype(jnp.float32) - yb_ref.astype(jnp.float32))))
    assert errb < 5e-2, f"bf16 mismatch: {errb}"

    print("KERNEL_OK")
</pallas_src>

<mosaic_0001>
module attributes {stable_mosaic.version = 11 : i64} {
  func.func @_chan_ln_kernel(%arg0: i32, %arg1: i32, %arg2: memref<1x64x256xf32, #tpu.memory_space<vmem>>, %arg3: memref<64x1xf32, #tpu.memory_space<vmem>>, %arg4: memref<1x64x256xf32, #tpu.memory_space<vmem>>) attributes {dimension_semantics = [#tpu.dimension_semantics<parallel>, #tpu.dimension_semantics<parallel>], iteration_bounds = array<i64: 2, 1>, scalar_prefetch = 0 : i64, scratch_operands = 0 : i64, tpu.core_type = #tpu.core_type<tc>, window_params = [{transform_indices = @transform_0, window_bounds = array<i64: 1, 64, 256>}, {pipeline_mode = #tpu.pipeline_mode<synchronous>, transform_indices = @transform_1, window_bounds = array<i64: 64, 1>}, {transform_indices = @transform_2, window_bounds = array<i64: 1, 64, 256>}]} {
    %c0 = arith.constant 0 : index
    %c0_0 = arith.constant 0 : index
    %c0_1 = arith.constant 0 : index
    %0 = vector.load %arg2[%c0, %c0_0, %c0_1] : memref<1x64x256xf32, #tpu.memory_space<vmem>>, vector<1x64x256xf32>
    %1 = vector.shape_cast %0 : vector<1x64x256xf32> to vector<64x256xf32>
    %cst = arith.constant dense<0.000000e+00> : vector<256xf32>
    %2 = vector.multi_reduction <add>, %1, %cst [0] : vector<64x256xf32> to vector<256xf32>
    %3 = vector.shape_cast %2 : vector<256xf32> to vector<1x256xf32>
    %cst_2 = arith.constant 1.562500e-02 : f32
    %4 = vector.broadcast %cst_2 : f32 to vector<1x256xf32>
    %5 = arith.mulf %3, %4 : vector<1x256xf32>
    %6 = arith.mulf %1, %1 : vector<64x256xf32>
    %cst_3 = arith.constant dense<0.000000e+00> : vector<256xf32>
    %7 = vector.multi_reduction <add>, %6, %cst_3 [0] : vector<64x256xf32> to vector<256xf32>
    %8 = vector.shape_cast %7 : vector<256xf32> to vector<1x256xf32>
    %cst_4 = arith.constant 1.562500e-02 : f32
    %9 = vector.broadcast %cst_4 : f32 to vector<1x256xf32>
    %10 = arith.mulf %8, %9 : vector<1x256xf32>
    %11 = arith.mulf %5, %5 : vector<1x256xf32>
    %12 = arith.subf %10, %11 : vector<1x256xf32>
    %cst_5 = arith.constant 9.99999997E-7 : f32
    %13 = vector.broadcast %cst_5 : f32 to vector<1x256xf32>
    %14 = arith.maximumf %12, %13 : vector<1x256xf32>
    %15 = math.rsqrt %14 : vector<1x256xf32>
    %c0_6 = arith.constant 0 : index
    %c0_7 = arith.constant 0 : index
    %16 = vector.load %arg3[%c0_6, %c0_7] : memref<64x1xf32, #tpu.memory_space<vmem>>, vector<64x1xf32>
    %17 = vector.broadcast %5 : vector<1x256xf32> to vector<64x256xf32>
    %18 = arith.subf %1, %17 : vector<64x256xf32>
    %19 = vector.broadcast %15 : vector<1x256xf32> to vector<64x256xf32>
    %20 = arith.mulf %18, %19 : vector<64x256xf32>
    %21 = vector.broadcast %16 : vector<64x1xf32> to vector<64x256xf32>
    %22 = arith.mulf %20, %21 : vector<64x256xf32>
    %c0_8 = arith.constant 0 : index
    %c0_9 = arith.constant 0 : index
    %c0_10 = arith.constant 0 : index
    %23 = vector.load %arg4[%c0_8, %c0_9, %c0_10] : memref<1x64x256xf32, #tpu.memory_space<vmem>>, vector<1x64x256xf32>
    %24 = vector.shape_cast %23 : vector<1x64x256xf32> to vector<64x256xf32>
    %25 = vector.shape_cast %22 : vector<64x256xf32> to vector<1x64x256xf32>
    tpu.vector_store %arg4[%c0_8, %c0_9, %c0_10], %25 {strides = array<i32>} : memref<1x64x256xf32, #tpu.memory_space<vmem>>, vector<1x64x256xf32>,
    return
  }
  func.func @transform_0(%arg0: i32, %arg1: i32) -> (i32, i32, i32) {
    %c0_i32 = arith.constant 0 : i32
    %c0_i32_0 = arith.constant 0 : i32
    return %arg0, %c0_i32, %arg1 : i32, i32, i32
  }
  func.func @transform_1(%arg0: i32, %arg1: i32) -> (i32, i32) {
    %c0_i32 = arith.constant 0 : i32
    %c0_i32_0 = arith.constant 0 : i32
    %c0_i32_1 = arith.constant 0 : i32
    return %c0_i32, %c0_i32_0 : i32, i32
  }
  func.func @transform_2(%arg0: i32, %arg1: i32) -> (i32, i32, i32) {
    %c0_i32 = arith.constant 0 : i32
    %c0_i32_0 = arith.constant 0 : i32
    return %arg0, %c0_i32, %arg1 : i32, i32, i32
  }
}

</mosaic_0001>

<bundles_post_ra>
// kernel: chan_layer_norm.1
= control target key start
LH: loop header
LB: loop body
LE: loop exit
PB: predicated region body
PF: predicated region fallthrough
CT: control target
= control target key end

     0   :  { %7 = vsyncpa [#allocation3], 0  ;;  %s1055_s0 = inlined_call_operand.hbm [shape: f32[2,64,200], index: 0, kind: input, shape index: {}]   ;;  %s1056_s1 = inlined_call_operand.vmem [shape: f32[64,1], index: 1, kind: input, shape index: {}]   ;;  %s1057_s2 = inlined_call_operand.hbm [shape: f32[2,64,200], index: 2, kind: output, shape index: {}]  }
   0x1   :  { %9 = vsyncpa [#allocation3 + $0x1], 0 }
   0x2   :  { %10 = vsyncpa [#allocation4], 0 }
   0x3   :  { %12 = vsyncpa [#allocation4 + $0x1], 0  ;;  %s740_s9 = smov 0   ;;  %s742_s10 = smov 0  }
   0x4   :  { %s744_s11 = smov 0   ;;  %s746_s12 = smov 0  }
   0x5   :  { %s748_s13 = smov 0   ;;  %s750_s14 = smov 0  }
   0x6 LB: > { %s515_s15 = sadd.s32 4294967295, %s718_s14   ;;  %s516_s16 = sadd.s32 4294967294, %s718_s14   ;;  %s718_s14 = sphi %s750_s14, %s18_s14   ;;  %s714_s13 = sphi %s748_s13, %s1066_s13   ;;  %s710_s12 = sphi %s746_s12, %s1065_s12   ;;  %s706_s11 = sphi %s744_s11, %s1064_s11   ;;  %s702_s10 = sphi %s742_s10, %s1063_s10   ;;  %s698_s9 = sphi %s740_s9, %s1062_s9  }
   0x7   : > { %s30_s17 = sadd.s32 1, %s714_s13  ;;  %s39_s18 = sadd.s32 1, %s706_s11 }
   0x8   : > { %p32_p0 = scmp.ge.s32.totalorder %s30_s17, 2  ;;  %p46_p1 = scmp.ne.s32.totalorder %s706_s11, %s702_s10 }
   0x9   : > { %p47_p2 = scmp.eq.s32.totalorder %s718_s14, 0  ;;  %p52_p3 = scmp.ne.s32.totalorder %s702_s10, %s698_s9 }
   0xa   : > { %s1068_s17 = smov (%p32_p0, %s30_s17), 0  ;;  %p53_p5 = scmp.eq.s32.totalorder %s515_s15, 0 }
   0xb   : > { %p781_p4 = por %p47_p2, %p46_p1  ;;  %s34_s20 = ssub.s32 %s714_s13, %s1068_s17 }
   0xc   : > { %p99_p6 = scmp.eq.s32.totalorder %s515_s15, 1  ;;  %p37_p7 = scmp.eq.s32.totalorder %s34_s20, 0 }
   0xd   : > { %p787_p8 = por %p53_p5, %p52_p3  ;;  %p105_p10 = scmp.eq.s32.totalorder %s516_s16, 1 }
   0xe   : > { %p791_p9 = por %p99_p6, %p46_p1  ;;  %p518_p12 = scmp.ge.s32.totalorder %s718_s14, 2 }
   0xf   : > { %s796_s23 = scalar_select %p37_p7, %s706_s11, %s39_s18  }
  0x10   : > { %p798_p11 = por %p105_p10, %p52_p3  ;;  %p544_p13 = scmp.lt.s32.totalorder %s718_s14, 2 }
  0x11   : > { %s128_s25 = sand.u32 1, %s706_s11   ;;  %s530_s27 = sshll.u32 %s714_s13, 7 }
  0x12   : > { %s519_s26 = sshll.u32 %s128_s25, 7  ;;  %s139_s30 = scalar_lea.hbm %s1055_s0, %s530_s27 }
  0x13   : > { %s132_s3 = scalar_lea.vmem [#allocation2], %s519_s26  ;;  %s140_s5 = sshll.u32 %s139_s30, 4  ;;  %s141_s5 = int_to_ptr.hbm [resolvable:$true] %s140_s5 }
  0x14   : > { %s142_s4 = sshll.u32 %s132_s3, 4  ;;  %p537_p0 = pnand %p544_p13, %p781_p4  ;;  %s143_s4 = int_to_ptr.vmem [resolvable:$true] %s142_s4 }
  0x15   : > { %p522_p1 = scmp.ge.s32.totalorder %s718_s14, 1  ;;  %s129_s6 = scalar_lea.sflag [#allocation3], %s128_s25 }
  0x16   : > { %s720_s7 = smov 256   ;;  %s721_s8 = smov 16  }
  0x17   : > { %539 = dma.hbm_to_vmem [thread:$0]  (!%p537_p0), %s141_s5, 2048, %s143_s4, %s129_s6, %s720_s7, %s720_s7, %s721_s8  }
  0x18   : > { %p150_p2 = scmp.lt.s32.totalorder %s718_s14, 3 }
  0x1a   : > { %p151_p3 = pnand %p522_p1, %p150_p2 }
  0x1b   : > { %s814_s15 = sand.u32 (!%p151_p3), 1, %s702_s10  }
  0x1c   : > { %154 = sbr.rel (%p151_p3) target bundleno = 176 (0xb0), region = 28  ;;  %s523_s16 = sshll.u32 (!%p151_p3), %s814_s15, 7 }
  0x1d   : > { %s157_s18 = scalar_lea.sflag (!%p151_p3), [#allocation3], %s814_s15  ;;  %s820_s19 = scalar_lea.vmem (!%p151_p3), [#allocation2], %s523_s16 }
  0x21   : > { %689 = dma.done.wait (%p787_p8), %s157_s18, 2048  }
  0x22   : > { %691 = vsyncadd (%p787_p8), %s157_s18, 4294965248  ;;  %v722_v0 = vmov 0   ;;  %v300_v1 = vld [vmem:[%s1056_s1 + $0x10] sm:$0xff]  ;;  %v298_v2 = vld [vmem:[%s1056_s1] sm:$0xff]  ;;  %s411_s21 = scalar_lea.sflag [#allocation4], %s814_s15  ;;  %s656_s5 = scalar_lea.hbm %s1057_s2, 256 }
  0x23   : > { %600 = vset.pattern.permute.xlu1 %v722_v0  ;;  %599 = vset.pattern.permute.xlu0 %v722_v0  ;;  %v302_v3 = vld [vmem:[%s1056_s1 + $0x20] sm:$0xff]  ;;  %v301_v4 = vld [vmem:[%s1056_s1 + $0x18] sm:$0xff]  ;;  %v299_v5 = vld [vmem:[%s1056_s1 + $0x8] sm:$0xff] }
  0x24   : > { %601 = vset.pattern.permute.xlu2 %v722_v0  ;;  %350 = vperm.xlu1 %600, %v300_v1   ;;  %v303_v6 = vld [vmem:[%s1056_s1 + $0x28] sm:$0xff]  ;;  %v305_v7 = vld [vmem:[%s1056_s1 + $0x38] sm:$0xff]  ;;  %v304_v8 = vld [vmem:[%s1056_s1 + $0x30] sm:$0xff] }
  0x25   : > { %340 = vperm.xlu0 %599, %v298_v2   ;;  %360 = vperm.xlu2 %601, %v302_v3   ;;  %v851_v9 = vld [vmem:[%s820_s19] sm:$0xff]  ;;  %v854_v10 = vld [vmem:[%s820_s19 + $0x8] sm:$0xff]  ;;  %v857_v11 = vld [vmem:[%s820_s19 + $0x10] sm:$0xff] }
  0x26   : > { %v860_v12 = vld [vmem:[%s820_s19 + $0x18] sm:$0xff]  ;;  %v200_v13 = vadd.f32 %v857_v11, %v851_v9  ;;  %v228_v14 = vmul.f32 %v851_v9, %v851_v9  ;;  %v229_v15 = vmul.f32 %v854_v10, %v854_v10  ;;  %v230_v16 = vmul.f32 %v857_v11, %v857_v11  ;;  %v871_v17 = vld [vmem:[%s820_s19 + $0x20] sm:$0xff]  ;;  %v874_v18 = vld [vmem:[%s820_s19 + $0x28] sm:$0xff] }
  0x27   : > { %v213_v19 = vadd.f32 %v860_v12, %v854_v10  ;;  %v231_v20 = vmul.f32 %v860_v12, %v860_v12  ;;  %v232_v22 = vmul.f32 %v871_v17, %v871_v17  ;;  %v233_v23 = vmul.f32 %v874_v18, %v874_v18  ;;  %v886_v25 = vld [vmem:[%s820_s19 + $0x30] sm:$0xff]  ;;  %v889_v26 = vld [vmem:[%s820_s19 + $0x38] sm:$0xff]  ;;  %v898_v33 = vld [vmem:[%s820_s19 + $0x40] sm:$0xff] }
  0x28   : > { %v201_v21 = vadd.f32 %v200_v13, %v871_v17  ;;  %v244_v24 = vadd.f32 %v230_v16, %v228_v14  ;;  %v234_v30 = vmul.f32 %v886_v25, %v886_v25  ;;  %v235_v31 = vmul.f32 %v889_v26, %v889_v26  ;;  %v901_v34 = vld [vmem:[%s820_s19 + $0x48] sm:$0xff]  ;;  %v910_v41 = vld [vmem:[%s820_s19 + $0x50] sm:$0xff]  ;;  %v913_v42 = vld [vmem:[%s820_s19 + $0x58] sm:$0xff] }
  0x29   : > { %v214_v27 = vadd.f32 %v213_v19, %v874_v18  ;;  %v257_v28 = vadd.f32 %v231_v20, %v229_v15  ;;  %v236_v38 = vmul.f32 %v898_v33, %v898_v33  ;;  %v237_v39 = vmul.f32 %v901_v34, %v901_v34  ;;  %v922_v49 = vld [vmem:[%s820_s19 + $0x60] sm:$0xff]  ;;  %v925_v50 = vld [vmem:[%s820_s19 + $0x68] sm:$0xff]  ;;  %v934_v57 = vld [vmem:[%s820_s19 + $0x70] sm:$0xff] }
  0x2a   : > { %v202_v29 = vadd.f32 %v201_v21, %v886_v25  ;;  %v245_v32 = vadd.f32 %v244_v24, %v232_v22  ;;  %v238_v46 = vmul.f32 %v910_v41, %v910_v41  ;;  %v239_v47 = vmul.f32 %v913_v42, %v913_v42  ;;  %v937_v58 = vld [vmem:[%s820_s19 + $0x78] sm:$0xff]  ;;  %s967_s19 = scalar_lea.vmem [#allocation5], %s523_s16  ;;  %s531_s16 = sshll.u32 %s710_s12, 7 }
  0x2b   : > { %v215_v35 = vadd.f32 %v214_v27, %v889_v26  ;;  %v258_v36 = vadd.f32 %v257_v28, %v233_v23  ;;  %v240_v54 = vmul.f32 %v922_v49, %v922_v49  ;;  %v241_v55 = vmul.f32 %v925_v50, %v925_v50  ;;  %s424_s27 = scalar_lea.hbm %s1057_s2, %s531_s16  ;;  %s425_s12 = sshll.u32 %s967_s19, 4  ;;  %s426_s12 = int_to_ptr.vmem [resolvable:$true] %s425_s12 }
  0x2c   : > { %355 = vperm.xlu1 %600, %v301_v4   ;;  %v203_v37 = vadd.f32 %v202_v29, %v898_v33  ;;  %v246_v40 = vadd.f32 %v245_v32, %v234_v30  ;;  %v242_v62 = vmul.f32 %v934_v57, %v934_v57  ;;  %v243_v63 = vmul.f32 %v937_v58, %v937_v58  ;;  %s427_s28 = sshll.u32 %s424_s27, 4  ;;  %s428_s28 = int_to_ptr.hbm [resolvable:$true] %s427_s28 }
  0x2d   : > { %345 = vperm.xlu0 %599, %v299_v5   ;;  %365 = vperm.xlu2 %601, %v303_v6   ;;  %v216_v43 = vadd.f32 %v215_v35, %v901_v34  ;;  %v259_v44 = vadd.f32 %v258_v36, %v235_v31  ;;  %s650_s29 = sshra.s32 %s428_s28, 4  ;;  %s651_s29 = int_to_ptr.hbm [resolvable:$true] %s650_s29 }
  0x2e   : > { %v204_v45 = vadd.f32 %v203_v37, %v910_v41  ;;  %v247_v48 = vadd.f32 %v246_v40, %v236_v38  ;;  %s652_s30 = scalar_lea.hbm %s651_s29, 128  ;;  %p657_p7 = scmp.lt.s32.totalorder %s651_s29, %s1057_s2 }
  0x2f   : > { %v217_v51 = vadd.f32 %v216_v43, %v913_v42  ;;  %v260_v52 = vadd.f32 %v259_v44, %v237_v39  ;;  %p653_p4 = scmp.ne.s32.totalorder %s651_s29, %s652_s30  ;;  %p658_p8 = scmp.lt.s32.totalorder %s656_s5, %s652_s30 }
  0x30   : > { %v205_v53 = vadd.f32 %v204_v45, %v922_v49  ;;  %v248_v56 = vadd.f32 %v247_v48, %v238_v46 }
  0x31   : > { %v218_v59 = vadd.f32 %v217_v51, %v925_v50  ;;  %v261_v60 = vadd.f32 %v260_v52, %v239_v47  ;;  %p654_p5 = pnand %p653_p4, %p791_p9  ;;  %p659_p10 = por %p658_p8, %p657_p7 }
  0x32   : > { %v206_v61 = vadd.f32 %v205_v53, %v934_v57  ;;  %v249_v0 = vadd.f32 %v248_v56, %v240_v54 }
  0x33   : > { %v219_v1 = vadd.f32 %v218_v59, %v937_v58  ;;  %v262_v2 = vadd.f32 %v261_v60, %v241_v55  ;;  %p655_p6 = pneg %p654_p5 }
  0x34   : > { %375 = vperm.xlu1 %600, %v305_v7   ;;  %v207_v3 = vrot.slane %v206_v61, 4  ;;  %v250_v4 = vadd.f32 %v249_v0, %v242_v62 }
  0x35   : > { %370 = vperm.xlu0 %599, %v304_v8   ;;  %v220_v5 = vrot.slane %v219_v1, 4  ;;  %v263_v6 = vadd.f32 %v262_v2, %v243_v63  ;;  %p660_p13 = pnand %p659_p10, %p655_p6 }
  0x36   : > { %v208_v7 = vadd.f32 %v207_v3, %v206_v61  ;;  %v251_v8 = vrot.slane %v250_v4, 4 }
  0x37   : > { %v221_v13 = vadd.f32 %v220_v5, %v219_v1  ;;  %v264_v14 = vrot.slane %v263_v6, 4 }
  0x38   : > { %v209_v15 = vrot.slane %v208_v7, 2  ;;  %v252_v16 = vadd.f32 %v251_v8, %v250_v4 }
  0x39   : > { %v222_v19 = vrot.slane %v221_v13, 2  ;;  %v265_v20 = vadd.f32 %v264_v14, %v263_v6 }
  0x3a   : > { %v210_v21 = vadd.f32 %v209_v15, %v208_v7  ;;  %v253_v22 = vrot.slane %v252_v16, 2 }
  0x3b   : > { %v223_v23 = vadd.f32 %v222_v19, %v221_v13  ;;  %v266_v24 = vrot.slane %v265_v20, 2 }
  0x3c   : > { %v211_v27 = vrot.slane %v210_v21, 1  ;;  %v254_v28 = vadd.f32 %v253_v22, %v252_v16 }
  0x3d   : > { %v224_v29 = vrot.slane %v223_v23, 1  ;;  %v267_v30 = vadd.f32 %v266_v24, %v265_v20 }
  0x3e   : > { %v212_v31 = vadd.f32 %v211_v27, %v210_v21  ;;  %v255_v32 = vrot.slane %v254_v28, 1 }
  0x3f   : > { %v225_v35 = vadd.f32 %v224_v29, %v223_v23  ;;  %v268_v36 = vrot.slane %v267_v30, 1 }
  0x40   : > { %v946_v37 = vmul.f32 0.015625, %v212_v31  ;;  %v256_v38 = vadd.f32 %v255_v32, %v254_v28 }
  0x41   : > { %v948_v39 = vmul.f32 0.015625, %v225_v35  ;;  %v269_v40 = vadd.f32 %v268_v36, %v267_v30 }
  0x42   : > { %v270_v43 = vmul.f32 0.015625, %v256_v38  ;;  %v272_v44 = vmul.f32 %v946_v37, %v946_v37  ;;  %v314_v3 = vsub.f32 %v898_v33, %v946_v37  ;;  %v316_v16 = vsub.f32 %v910_v41, %v946_v37 }
  0x43   : > { %v271_v45 = vmul.f32 0.015625, %v269_v40  ;;  %v273_v46 = vmul.f32 %v948_v39, %v948_v39  ;;  %v315_v4 = vsub.f32 %v901_v34, %v948_v39  ;;  %v317_v19 = vsub.f32 %v913_v42, %v948_v39 }
  0x44   : > { %v274_v47 = vsub.f32 %v270_v43, %v272_v44  ;;  %v310_v41 = vsub.f32 %v871_v17, %v946_v37  ;;  %v311_v42 = vsub.f32 %v874_v18, %v948_v39  ;;  %v306_v23 = vsub.f32 %v851_v9, %v946_v37 }
  0x45   : > { %v275_v48 = vsub.f32 %v271_v45, %v273_v46  ;;  %v307_v24 = vsub.f32 %v854_v10, %v948_v39  ;;  %v312_v18 = vsub.f32 %v886_v25, %v946_v37  ;;  %v313_v9 = vsub.f32 %v889_v26, %v948_v39 }
  0x46   : > { %v276_v51 = vmax.f32 %v274_v47, 1e-06  ;;  %v308_v36 = vsub.f32 %v857_v11, %v946_v37  ;;  %v309_v40 = vsub.f32 %v860_v12, %v948_v39  ;;  %v320_v46 = vsub.f32 %v934_v57, %v946_v37 }
  0x47   : > { %v277_v52 = vmax.f32 %v275_v48, 1e-06  ;;  %v321_v12 = vsub.f32 %v937_v58, %v948_v39 }
  0x48   : > { %602 = vrsqrt.f32 %v276_v51  ;;  %vm284_vm0 = vweird.f32 %v276_v51 }
  0x49   : > { %604 = vrsqrt.f32 %v277_v52  ;;  %vm294_vm2 = vweird.f32 %v277_v52 }
  0x4e   : > { %v603_v53 = vpop.eup %602 }
  0x4f   : > { %v605_v54 = vpop.eup %604  ;;  %v279_v55 = vmul.f32 %v603_v53, %v276_v51  ;;  %vm285_vm1 = vweird.f32 %v603_v53 }
  0x50   : > { %v289_v56 = vmul.f32 %v605_v54, %v277_v52  ;;  %vm295_vm3 = vweird.f32 %v605_v54  ;;  %vm286_vm4 = vmor %vm284_vm0, %vm285_vm1  ;;  %v318_v52 = vsub.f32 %v922_v49, %v946_v37 }
  0x51   : > { %v280_v59 = vmul.f32 %v603_v53, %v279_v55  ;;  %vm296_vm5 = vmor %vm294_vm2, %vm295_vm3 }
  0x52   : > { %v290_v60 = vmul.f32 %v605_v54, %v289_v56 }
  0x53   : > { %v281_v61 = vmul.f32 0.5, %v280_v59 }
  0x54   : > { %v291_v62 = vmul.f32 0.5, %v290_v60 }
  0x55   : > { %v282_v63 = vsub.f32 1.5, %v281_v61 }
  0x56   : > { %v292_v0 = vsub.f32 1.5, %v291_v62 }
  0x57   : > { %v283_v1 = vmul.f32 %v603_v53, %v282_v63 }
  0x58   : > { %v293_v2 = vmul.f32 %v605_v54, %v292_v0 }
  0x59   : > { %v287_v5 = vsel %vm286_vm4, %v603_v53, %v283_v1 }
  0x5a   : > { %v958_v6 = vsel %vm296_vm5, %v605_v54, %v293_v2  ;;  %v330_v7 = vmul.f32 %v314_v3, %v287_v5  ;;  %v332_v33 = vmul.f32 %v316_v16, %v287_v5  ;;  %v326_v27 = vmul.f32 %v310_v41, %v287_v5 }
  0x5b   : > { %v331_v8 = vmul.f32 %v315_v4, %v958_v6  ;;  %v333_v34 = vmul.f32 %v317_v19, %v958_v6  ;;  %v327_v28 = vmul.f32 %v311_v42, %v958_v6  ;;  %v322_v29 = vmul.f32 %v306_v23, %v287_v5 }
  0x5c   : > { %v323_v30 = vmul.f32 %v307_v24, %v958_v6  ;;  %v328_v43 = vmul.f32 %v312_v18, %v287_v5  ;;  %v329_v25 = vmul.f32 %v313_v9, %v958_v6  ;;  %v324_v26 = vmul.f32 %v308_v36, %v287_v5 }
  0x5d   : > { %v325_v44 = vmul.f32 %v309_v40, %v958_v6  ;;  %v319_v54 = vsub.f32 %v925_v50, %v948_v39  ;;  %v336_v57 = vmul.f32 %v320_v46, %v287_v5  ;;  %v337_v55 = vmul.f32 %v321_v12, %v958_v6 }
  0x5e   : > { %v334_v58 = vmul.f32 %v318_v52, %v287_v5 }
  0x5f   : > { %v335_v49 = vmul.f32 %v319_v54, %v958_v6 }
  0x7f   : > { %v361_v13 = vpop.permute.xlu2 %360 }
  0x80   : > { %v386_v14 = vmul.f32 %v361_v13, %v330_v7  ;;  %v387_v15 = vmul.f32 %v361_v13, %v331_v8 }
  0x82   : > { %402 = vst [vmem:[%s967_s19 + $0x40] sm:$0xff] %v386_v14 }
  0x83   : > { %403 = vst [vmem:[%s967_s19 + $0x48] sm:$0xff] %v387_v15 }
  0x87   : > { %v366_v20 = vpop.permute.xlu2 %365 }
  0x88   : > { %v388_v21 = vmul.f32 %v366_v20, %v332_v33  ;;  %v389_v22 = vmul.f32 %v366_v20, %v333_v34 }
  0x8a   : > { %404 = vst [vmem:[%s967_s19 + $0x50] sm:$0xff] %v388_v21 }
  0x8b   : > { %405 = vst [vmem:[%s967_s19 + $0x58] sm:$0xff] %v389_v22 }
  0x96   : > { %v351_v31 = vpop.permute.xlu1 %350 }
  0x97   : > { %v341_v17 = vpop.permute.xlu0 %340  ;;  %v382_v32 = vmul.f32 %v351_v31, %v326_v27  ;;  %v383_v35 = vmul.f32 %v351_v31, %v327_v28 }
  0x98   : > { %v378_v10 = vmul.f32 %v341_v17, %v322_v29  ;;  %v379_v38 = vmul.f32 %v341_v17, %v323_v30 }
  0x99   : > { %398 = vst [vmem:[%s967_s19 + $0x20] sm:$0xff] %v382_v32 }
  0x9a   : > { %399 = vst [vmem:[%s967_s19 + $0x28] sm:$0xff] %v383_v35 }
  0x9b   : > { %394 = vst [vmem:[%s967_s19] sm:$0xff] %v378_v10 }
  0x9c   : > { %395 = vst [vmem:[%s967_s19 + $0x8] sm:$0xff] %v379_v38 }
  0x9e   : > { %v356_v45 = vpop.permute.xlu1 %355 }
  0x9f   : > { %v346_v11 = vpop.permute.xlu0 %345  ;;  %v384_v47 = vmul.f32 %v356_v45, %v328_v43  ;;  %v385_v48 = vmul.f32 %v356_v45, %v329_v25 }
  0xa0   : > { %v380_v51 = vmul.f32 %v346_v11, %v324_v26  ;;  %v381_v53 = vmul.f32 %v346_v11, %v325_v44 }
  0xa1   : > { %400 = vst [vmem:[%s967_s19 + $0x30] sm:$0xff] %v384_v47 }
  0xa2   : > { %401 = vst [vmem:[%s967_s19 + $0x38] sm:$0xff] %v385_v48 }
  0xa3   : > { %396 = vst [vmem:[%s967_s19 + $0x10] sm:$0xff] %v380_v51 }
  0xa4   : > { %397 = vst [vmem:[%s967_s19 + $0x18] sm:$0xff] %v381_v53 }
  0xa6   : > { %v376_v50 = vpop.permute.xlu1 %375 }
  0xa7   : > { %v371_v37 = vpop.permute.xlu0 %370  ;;  %v392_v39 = vmul.f32 %v376_v50, %v336_v57  ;;  %v393_v56 = vmul.f32 %v376_v50, %v337_v55 }
  0xa8   : > { %v390_v59 = vmul.f32 %v371_v37, %v334_v58  ;;  %v391_v60 = vmul.f32 %v371_v37, %v335_v49 }
  0xa9   : > { %408 = vst [vmem:[%s967_s19 + $0x70] sm:$0xff] %v392_v39 }
  0xaa   : > { %409 = vst [vmem:[%s967_s19 + $0x78] sm:$0xff] %v393_v56 }
  0xab   : > { %406 = vst [vmem:[%s967_s19 + $0x60] sm:$0xff] %v390_v59 }
  0xac   : > { %407 = vst [vmem:[%s967_s19 + $0x68] sm:$0xff] %v391_v60 }
  0xad   : > { %663 = shalt.err (!%p660_p13)
}
  0xae   : > { %s723_s15 = smov 256   ;;  %s724_s8 = smov 16  }
  0xaf   : > { %534 = dma.vmem_to_hbm [thread:$0]  (%p791_p9), %s426_s12, 2048, %s428_s28, %s411_s21, %s723_s15, %s723_s15, %s724_s8  }
  0xb0 PF: > { %s442_s18 = sand.u32 1, %s698_s9   ;;  %p541_p0 = pnand %p518_p12, %p798_p11 }
  0xb1   : > { %s443_s20 = scalar_lea.sflag [#allocation4], %s442_s18 }
  0xb2   : > { %p542_p1 = pneg %p541_p0 }
  0xb4   : > { %693 = dma.done.wait (%p542_p1), %s443_s20, 2048  }
  0xb5   : > { %695 = vsyncadd (%p542_p1), %s443_s20, 4294965248  ;;  %s18_s14 = sadd.s32 1, %s718_s14   ;;  %s1062_s9 = smov %s702_s10 }
  0xb6   : > { %p15_p2 = scmp.ge.s32.totalorder %s18_s14, 4   ;;  %s1063_s10 = smov %s706_s11 }
  0xb7   : > { %s1064_s11 = smov %s796_s23  ;;  %s1065_s12 = smov %s714_s13 }
  0xb8   : > { %s1066_s13 = smov %s1068_s17  ;;  %17 = sbr.rel (!%p15_p2) target bundleno = 6 (0x6), region = 73 }
  0xbd   :  { %449 = vsyncpa [#allocation3], 1 }
  0xbe   :  { %451 = vsyncpa [#allocation3 + $0x1], 1 }
  0xbf   :  { %452 = vsyncpa [#allocation4], 1 }
  0xc0   :  { %454 = vsyncpa [#allocation4 + $0x1], 1 }

</bundles_post_ra>
